<compile_context>
chip_gen: v6e
topology: v6e:2x2x1
jax: 0.10.0
libtpu: 0.0.40
codegen_flags: <defaults>
</compile_context>

<pallas_src>
import jax
import jax.numpy as jnp
import numpy as np
from jax import lax
from jax.experimental import pallas as pl
from jax.experimental.pallas import tpu as pltpu


# -----------------------------------------------------------------------------
# Fused [conv3x3 + BN(folded) + ReLU] x 2 kernel, padded-flat layout.
# -----------------------------------------------------------------------------
def _make_fused_unit_kernel(C_in, C_mid, Wp, S_lane):
    # Output (padded, flattened) position q of tap t = kh*3 + kw needs the
    # input at q + s with s = (kh-1)*Wp + (kw-1).  pltpu.roll follows jnp.roll
    # semantics (out[i] = in[(i - k) mod L]; the interpret-mode reference of
    # roll_p is jnp.roll), so roll by k = (-s) mod L gives out[q] = in[q + s].
    shifts = [(kh - 1) * Wp + (kw - 1) for kh in range(3) for kw in range(3)]
    rolls = [(-s) % S_lane for s in shifts]

    def stack_taps(x, stk_ref, c):
        # Write the 9 shifted copies of x (c, S_lane) at sublane offsets t*c.
        for t, k in enumerate(rolls):
            xs = x if k == 0 else pltpu.roll(x, k, 1)      # XLU lane rotation
            stk_ref[t * c:(t + 1) * c, :] = xs

    def kernel(xpf_ref, w1_ref, b1_ref, w2_ref, b2_ref, mask_ref, o_ref,
               stk1_ref, stk2_ref):
        # ---- conv1 + BN1 (scale folded into w1) + ReLU ----------------------
        x = xpf_ref[0]                                     # (C_in, S_lane)
        stack_taps(x, stk1_ref, C_in)
        h = jnp.dot(w1_ref[...], stk1_ref[...],            # (C_mid,9*C_in)@(9*C_in,S)
                    preferred_element_type=jnp.float32)
        h = jnp.maximum(h + b1_ref[...], 0.0) * mask_ref[...]   # re-zero ring/tail

        # ---- conv2 + BN2 + ReLU (ring/tail of y is sliced away -> no mask) --
        stack_taps(h, stk2_ref, C_mid)
        y = jnp.dot(w2_ref[...], stk2_ref[...],
                    preferred_element_type=jnp.float32)
        y = jnp.maximum(y + b2_ref[...], 0.0)
        o_ref[0] = y.astype(o_ref.dtype)

    return kernel


def _fused_double_conv(xpf, w1s, b1, w2s, b2, mask, H, W):
    """xpf: (N, C_in, S_lane) zero-padded image, spatial flattened on lanes.
    Returns (N, C_mid, S_lane) output of conv1->bn->relu->conv2->bn->relu
    (valid only at interior positions; ring/tail hold don't-care values)."""
    N, C_in, S_lane = xpf.shape
    C_mid = w1s.shape[0]
    Wp = W + 2

    kernel = _make_fused_unit_kernel(C_in, C_mid, Wp, S_lane)

    flops = 2 * N * S_lane * 9 * (C_in * C_mid + C_mid * C_mid)
    bytes_accessed = 4 * (xpf.size + N * C_mid * S_lane + w1s.size + w2s.size
                          + b1.size + b2.size + mask.size)

    return pl.pallas_call(
        kernel,
        out_shape=jax.ShapeDtypeStruct((N, C_mid, S_lane), xpf.dtype),
        grid=(N,),
        in_specs=[
            pl.BlockSpec((1, C_in, S_lane), lambda n: (n, 0, 0)),
            pl.BlockSpec((C_mid, 9 * C_in), lambda n: (0, 0)),
            pl.BlockSpec((C_mid, 1), lambda n: (0, 0)),
            pl.BlockSpec((C_mid, 9 * C_mid), lambda n: (0, 0)),
            pl.BlockSpec((C_mid, 1), lambda n: (0, 0)),
            pl.BlockSpec((1, S_lane), lambda n: (0, 0)),
        ],
        out_specs=pl.BlockSpec((1, C_mid, S_lane), lambda n: (n, 0, 0)),
        scratch_shapes=[
            pltpu.VMEM((9 * C_in, S_lane), jnp.float32),    # stacked taps, conv1
            pltpu.VMEM((9 * C_mid, S_lane), jnp.float32),   # stacked taps, conv2
        ],
        compiler_params=pltpu.CompilerParams(
            dimension_semantics=("parallel",),
            vmem_limit_bytes=32 * 1024 * 1024,
        ),
        cost_estimate=pl.CostEstimate(
            flops=flops, transcendentals=0, bytes_accessed=bytes_accessed),
    )(xpf, w1s, b1, w2s, b2, mask)


# -----------------------------------------------------------------------------
# Small JAX glue (low-resolution tensors only).
# -----------------------------------------------------------------------------
def _upsample_matrix(in_size, out_size):
    """1-D bilinear interpolation matrix, PyTorch align_corners=True semantics."""
    a = np.zeros((out_size, in_size), dtype=np.float32)
    scale = 0.0 if out_size == 1 else (in_size - 1) / (out_size - 1)
    for i in range(out_size):
        src = i * scale
        i0 = min(int(np.floor(src)), in_size - 1)
        i1 = min(i0 + 1, in_size - 1)
        f = src - i0
        a[i, i0] += 1.0 - f
        a[i, i1] += f
    return a


def _bilinear_up2x_align_corners(x):
    n, c, h, w = x.shape
    ah = jnp.asarray(_upsample_matrix(h, 2 * h))
    aw = jnp.asarray(_upsample_matrix(w, 2 * w))
    return jnp.einsum("ih,nchw,jw->ncij", ah, x, aw)


def _pad_crop_to(up, H, W):
    """F.pad(x1, [left, right, top, bottom]) placement (negative pads crop).
    Returns (possibly cropped) tensor plus the non-negative top/left offsets."""
    uh, uw = up.shape[2], up.shape[3]
    dh, dw = H - uh, W - uw
    top, left = dh // 2, dw // 2
    bottom, right = dh - top, dw - left
    r0, r1 = max(-top, 0), uh - max(-bottom, 0)
    c0, c1 = max(-left, 0), uw - max(-right, 0)
    up = up[:, :, r0:r1, c0:c1]
    return up, max(top, 0), max(left, 0)


def _interior_mask(H, W, S_lane, dtype):
    Hp, Wp = H + 2, W + 2
    m2 = np.zeros((Hp, Wp), dtype=np.float32)
    m2[1:1 + H, 1:1 + W] = 1.0
    m = np.zeros((1, S_lane), dtype=np.float32)
    m[0, :Hp * Wp] = m2.reshape(-1)
    return jnp.asarray(m, dtype=dtype)


def _bn_scale_shift(conv_b, gamma, beta, mean, var, eps):
    scale = gamma / jnp.sqrt(var + eps)
    shift = beta + scale * (conv_b - mean)
    return scale.astype(jnp.float32), shift.reshape(-1, 1).astype(jnp.float32)


def _stack_folded_weights(w, scale):
    """(C_out, C_in, 3, 3) -> (C_out, 9*C_in); column index t*C_in + c with
    tap t = kh*3 + kw, BatchNorm scale folded into the weights."""
    c_out, c_in = w.shape[0], w.shape[1]
    ws = jnp.transpose(w, (0, 2, 3, 1)).reshape(c_out, 9 * c_in)
    return (ws * scale.reshape(-1, 1)).astype(jnp.float32)


# -----------------------------------------------------------------------------
# VanillaUNetUpLayer forward.
# -----------------------------------------------------------------------------
def vanilla_unet_up_layer(x1, x2, params, eps=1e-5):
    N, C2, H, W = x2.shape
    Hp, Wp = H + 2, W + 2
    S = Hp * Wp
    S_lane = ((S + 127) // 128) * 128     # lane-dense flat spatial length

    # Upsample x1 (bilinear x2, align_corners=True) and compute its placement.
    up = _bilinear_up2x_align_corners(x1)
    up, top, left = _pad_crop_to(up, H, W)
    uh, uw = up.shape[2], up.shape[3]
    C1 = up.shape[1]
    C_in = C1 + C2

    # Assemble conv1's input directly in the kernel's padded-flat layout:
    # place `up` within (H, W), concat channels, add the 1-px zero ring,
    # flatten spatial onto lanes, pad to a multiple of 128.
    up = jnp.pad(up, ((0, 0), (0, 0), (top, H - top - uh), (left, W - left - uw)))
    x = jnp.concatenate([x2, up], axis=1)                  # (N, C_in, H, W)
    xp = jnp.pad(x, ((0, 0), (0, 0), (1, 1), (1, 1)))      # (N, C_in, Hp, Wp)
    xpf = xp.reshape(N, C_in, S)
    if S_lane > S:
        xpf = jnp.pad(xpf, ((0, 0), (0, 0), (0, S_lane - S)))

    mask = _interior_mask(H, W, S_lane, x2.dtype)

    sc1, sh1 = _bn_scale_shift(params["conv1_b"], params["bn1_gamma"],
                               params["bn1_beta"], params["bn1_mean"],
                               params["bn1_var"], eps)
    w1s = _stack_folded_weights(params["conv1_w"], sc1)
    sc2, sh2 = _bn_scale_shift(params["conv2_b"], params["bn2_gamma"],
                               params["bn2_beta"], params["bn2_mean"],
                               params["bn2_var"], eps)
    w2s = _stack_folded_weights(params["conv2_w"], sc2)

    y = _fused_double_conv(xpf, w1s, sh1, w2s, sh2, mask, H, W)

    C_out = w1s.shape[0]
    out = y[:, :, :S].reshape(N, C_out, Hp, Wp)[:, :, 1:1 + H, 1:1 + W]
    return out


# -----------------------------------------------------------------------------
# Pure-JAX reference (same semantics; BN in inference / running-stats form).
# -----------------------------------------------------------------------------
def _reference_forward(x1, x2, params, eps=1e-5):
    H, W = x2.shape[2], x2.shape[3]
    up = _bilinear_up2x_align_corners(x1)
    up, top, left = _pad_crop_to(up, H, W)
    uh, uw = up.shape[2], up.shape[3]
    up = jnp.pad(up, ((0, 0), (0, 0), (top, H - top - uh), (left, W - left - uw)))
    x = jnp.concatenate([x2, up], axis=1)

    def block(x, w, b, g, be, m, v):
        y = lax.conv_general_dilated(
            x, w, window_strides=(1, 1), padding=((1, 1), (1, 1)),
            dimension_numbers=("NCHW", "OIHW", "NCHW"),
            precision=lax.Precision.HIGHEST)
        y = y + b[None, :, None, None]
        y = (y - m[None, :, None, None]) / jnp.sqrt(v[None, :, None, None] + eps)
        y = y * g[None, :, None, None] + be[None, :, None, None]
        return jnp.maximum(y, 0.0)

    h = block(x, params["conv1_w"], params["conv1_b"], params["bn1_gamma"],
              params["bn1_beta"], params["bn1_mean"], params["bn1_var"])
    return block(h, params["conv2_w"], params["conv2_b"], params["bn2_gamma"],
                 params["bn2_beta"], params["bn2_mean"], params["bn2_var"])


if __name__ == "__main__":
    # VanillaUNetUpLayer(in_channels=4, out_channels=8)
    N = 2
    C1, C2 = 2, 2              # x1 (deep path) channels, x2 (skip) channels
    in_channels = C1 + C2      # 4
    out_channels = 8
    h1, w1_ = 8, 8             # x1 spatial; upsampled 2x -> 16x16 (= x2 spatial)
    H, W = 16, 16

    key = jax.random.PRNGKey(0)
    ks = jax.random.split(key, 12)
    x1 = jax.random.normal(ks[0], (N, C1, h1, w1_), jnp.float32)
    x2 = jax.random.normal(ks[1], (N, C2, H, W), jnp.float32)

    params = dict(
        conv1_w=0.1 * jax.random.normal(ks[2], (out_channels, in_channels, 3, 3), jnp.float32),
        conv1_b=0.1 * jax.random.normal(ks[3], (out_channels,), jnp.float32),
        bn1_gamma=1.0 + 0.1 * jax.random.normal(ks[4], (out_channels,), jnp.float32),
        bn1_beta=0.1 * jax.random.normal(ks[5], (out_channels,), jnp.float32),
        bn1_mean=0.1 * jax.random.normal(ks[6], (out_channels,), jnp.float32),
        bn1_var=1.0 + 0.2 * jax.random.uniform(ks[7], (out_channels,), jnp.float32),
        conv2_w=0.1 * jax.random.normal(ks[8], (out_channels, out_channels, 3, 3), jnp.float32),
        conv2_b=0.1 * jax.random.normal(ks[9], (out_channels,), jnp.float32),
        bn2_gamma=1.0 + 0.1 * jax.random.normal(ks[10], (out_channels,), jnp.float32),
        bn2_beta=0.1 * jax.random.normal(ks[11], (out_channels,), jnp.float32),
        bn2_mean=jnp.zeros((out_channels,), jnp.float32),
        bn2_var=jnp.ones((out_channels,), jnp.float32),
    )

    out = vanilla_unet_up_layer(x1, x2, params)
    out = jax.block_until_ready(out)
    assert out.shape == (N, out_channels, H, W), out.shape

    ref = _reference_forward(x1, x2, params)
    err = float(jnp.max(jnp.abs(out - ref)))
    assert jnp.allclose(out, ref, atol=1e-3, rtol=1e-3), f"max abs err {err}"

    print("KERNEL_OK")
</pallas_src>

<mosaic_0001>
module attributes {stable_mosaic.version = 11 : i64} {
  func.func @kernel(%arg0: i32, %arg1: memref<1x4x384xf32, #tpu.memory_space<vmem>>, %arg2: memref<8x36xf32, #tpu.memory_space<vmem>>, %arg3: memref<8x1xf32, #tpu.memory_space<vmem>>, %arg4: memref<8x72xf32, #tpu.memory_space<vmem>>, %arg5: memref<8x1xf32, #tpu.memory_space<vmem>>, %arg6: memref<1x384xf32, #tpu.memory_space<vmem>>, %arg7: memref<1x8x384xf32, #tpu.memory_space<vmem>>, %arg8: memref<36x384xf32, #tpu.memory_space<vmem>>, %arg9: memref<72x384xf32, #tpu.memory_space<vmem>>) attributes {dimension_semantics = [#tpu.dimension_semantics<parallel>], iteration_bounds = array<i64: 2>, scalar_prefetch = 0 : i64, scratch_operands = 2 : i64, tpu.core_type = #tpu.core_type<tc>, window_params = [{transform_indices = @transform_0, window_bounds = array<i64: 1, 4, 384>}, {pipeline_mode = #tpu.pipeline_mode<synchronous>, transform_indices = @transform_1, window_bounds = array<i64: 8, 36>}, {pipeline_mode = #tpu.pipeline_mode<synchronous>, transform_indices = @transform_2, window_bounds = array<i64: 8, 1>}, {pipeline_mode = #tpu.pipeline_mode<synchronous>, transform_indices = @transform_3, window_bounds = array<i64: 8, 72>}, {pipeline_mode = #tpu.pipeline_mode<synchronous>, transform_indices = @transform_4, window_bounds = array<i64: 8, 1>}, {pipeline_mode = #tpu.pipeline_mode<synchronous>, transform_indices = @transform_5, window_bounds = array<i64: 1, 384>}, {transform_indices = @transform_6, window_bounds = array<i64: 1, 8, 384>}]} {
    %c0 = arith.constant 0 : index
    %c0_0 = arith.constant 0 : index
    %c0_1 = arith.constant 0 : index
    %0 = vector.load %arg1[%c0, %c0_0, %c0_1] : memref<1x4x384xf32, #tpu.memory_space<vmem>>, vector<1x4x384xf32>
    %1 = vector.shape_cast %0 : vector<1x4x384xf32> to vector<4x384xf32>
    %c19_i32 = arith.constant 19 : i32
    %2 = tpu.dynamic_rotate %1 by %c19_i32 dim 1 : vector<4x384xf32>, i32 -> vector<4x384xf32>
    %c0_2 = arith.constant 0 : index
    %c0_3 = arith.constant 0 : index
    %3 = vector.load %arg8[%c0_2, %c0_3] : memref<36x384xf32, #tpu.memory_space<vmem>>, vector<4x384xf32>
    tpu.vector_store %arg8[%c0_2, %c0_3], %2 {strides = array<i32>} : memref<36x384xf32, #tpu.memory_space<vmem>>, vector<4x384xf32>,
    %c18_i32 = arith.constant 18 : i32
    %4 = tpu.dynamic_rotate %1 by %c18_i32 dim 1 : vector<4x384xf32>, i32 -> vector<4x384xf32>
    %c4 = arith.constant 4 : index
    %c0_4 = arith.constant 0 : index
    %5 = vector.load %arg8[%c4, %c0_4] : memref<36x384xf32, #tpu.memory_space<vmem>>, vector<4x384xf32>
    tpu.vector_store %arg8[%c4, %c0_4], %4 {strides = array<i32>} : memref<36x384xf32, #tpu.memory_space<vmem>>, vector<4x384xf32>,
    %c17_i32 = arith.constant 17 : i32
    %6 = tpu.dynamic_rotate %1 by %c17_i32 dim 1 : vector<4x384xf32>, i32 -> vector<4x384xf32>
    %c8 = arith.constant 8 : index
    %c0_5 = arith.constant 0 : index
    %7 = vector.load %arg8[%c8, %c0_5] : memref<36x384xf32, #tpu.memory_space<vmem>>, vector<4x384xf32>
    tpu.vector_store %arg8[%c8, %c0_5], %6 {strides = array<i32>} : memref<36x384xf32, #tpu.memory_space<vmem>>, vector<4x384xf32>,
    %c1_i32 = arith.constant 1 : i32
    %8 = tpu.dynamic_rotate %1 by %c1_i32 dim 1 : vector<4x384xf32>, i32 -> vector<4x384xf32>
    %c12 = arith.constant 12 : index
    %c0_6 = arith.constant 0 : index
    %9 = vector.load %arg8[%c12, %c0_6] : memref<36x384xf32, #tpu.memory_space<vmem>>, vector<4x384xf32>
    tpu.vector_store %arg8[%c12, %c0_6], %8 {strides = array<i32>} : memref<36x384xf32, #tpu.memory_space<vmem>>, vector<4x384xf32>,
    %c16 = arith.constant 16 : index
    %c0_7 = arith.constant 0 : index
    %10 = vector.load %arg8[%c16, %c0_7] : memref<36x384xf32, #tpu.memory_space<vmem>>, vector<4x384xf32>
    tpu.vector_store %arg8[%c16, %c0_7], %1 {strides = array<i32>} : memref<36x384xf32, #tpu.memory_space<vmem>>, vector<4x384xf32>,
    %c383_i32 = arith.constant 383 : i32
    %11 = tpu.dynamic_rotate %1 by %c383_i32 dim 1 : vector<4x384xf32>, i32 -> vector<4x384xf32>
    %c20 = arith.constant 20 : index
    %c0_8 = arith.constant 0 : index
    %12 = vector.load %arg8[%c20, %c0_8] : memref<36x384xf32, #tpu.memory_space<vmem>>, vector<4x384xf32>
    tpu.vector_store %arg8[%c20, %c0_8], %11 {strides = array<i32>} : memref<36x384xf32, #tpu.memory_space<vmem>>, vector<4x384xf32>,
    %c367_i32 = arith.constant 367 : i32
    %13 = tpu.dynamic_rotate %1 by %c367_i32 dim 1 : vector<4x384xf32>, i32 -> vector<4x384xf32>
    %c24 = arith.constant 24 : index
    %c0_9 = arith.constant 0 : index
    %14 = vector.load %arg8[%c24, %c0_9] : memref<36x384xf32, #tpu.memory_space<vmem>>, vector<4x384xf32>
    tpu.vector_store %arg8[%c24, %c0_9], %13 {strides = array<i32>} : memref<36x384xf32, #tpu.memory_space<vmem>>, vector<4x384xf32>,
    %c366_i32 = arith.constant 366 : i32
    %15 = tpu.dynamic_rotate %1 by %c366_i32 dim 1 : vector<4x384xf32>, i32 -> vector<4x384xf32>
    %c28 = arith.constant 28 : index
    %c0_10 = arith.constant 0 : index
    %16 = vector.load %arg8[%c28, %c0_10] : memref<36x384xf32, #tpu.memory_space<vmem>>, vector<4x384xf32>
    tpu.vector_store %arg8[%c28, %c0_10], %15 {strides = array<i32>} : memref<36x384xf32, #tpu.memory_space<vmem>>, vector<4x384xf32>,
    %c365_i32 = arith.constant 365 : i32
    %17 = tpu.dynamic_rotate %1 by %c365_i32 dim 1 : vector<4x384xf32>, i32 -> vector<4x384xf32>
    %c32 = arith.constant 32 : index
    %c0_11 = arith.constant 0 : index
    %18 = vector.load %arg8[%c32, %c0_11] : memref<36x384xf32, #tpu.memory_space<vmem>>, vector<4x384xf32>
    tpu.vector_store %arg8[%c32, %c0_11], %17 {strides = array<i32>} : memref<36x384xf32, #tpu.memory_space<vmem>>, vector<4x384xf32>,
    %c0_12 = arith.constant 0 : index
    %c0_13 = arith.constant 0 : index
    %19 = vector.load %arg2[%c0_12, %c0_13] : memref<8x36xf32, #tpu.memory_space<vmem>>, vector<8x36xf32>
    %c0_14 = arith.constant 0 : index
    %c0_15 = arith.constant 0 : index
    %20 = vector.load %arg8[%c0_14, %c0_15] : memref<36x384xf32, #tpu.memory_space<vmem>>, vector<36x384xf32>
    %cst = arith.constant dense<0.000000e+00> : vector<8x384xf32>
    %21 = tpu.matmul %19, %20, %cst {dimension_numbers = #tpu.dot_dimension_numbers<[1], [0], [0], [1], [0, 0, 1, 1], [], []>} : vector<8x36xf32>, vector<36x384xf32>, vector<8x384xf32> -> vector<8x384xf32>
    %c0_16 = arith.constant 0 : index
    %c0_17 = arith.constant 0 : index
    %22 = vector.load %arg3[%c0_16, %c0_17] : memref<8x1xf32, #tpu.memory_space<vmem>>, vector<8x1xf32>
    %23 = vector.broadcast %22 : vector<8x1xf32> to vector<8x384xf32>
    %24 = arith.addf %21, %23 : vector<8x384xf32>
    %cst_18 = arith.constant 0.000000e+00 : f32
    %25 = vector.broadcast %cst_18 : f32 to vector<8x384xf32>
    %26 = arith.maximumf %24, %25 : vector<8x384xf32>
    %c0_19 = arith.constant 0 : index
    %c0_20 = arith.constant 0 : index
    %27 = vector.load %arg6[%c0_19, %c0_20] : memref<1x384xf32, #tpu.memory_space<vmem>>, vector<1x384xf32>
    %28 = vector.broadcast %27 : vector<1x384xf32> to vector<8x384xf32>
    %29 = arith.mulf %26, %28 : vector<8x384xf32>
    %c19_i32_21 = arith.constant 19 : i32
    %30 = tpu.dynamic_rotate %29 by %c19_i32_21 dim 1 : vector<8x384xf32>, i32 -> vector<8x384xf32>
    %c0_22 = arith.constant 0 : index
    %c0_23 = arith.constant 0 : index
    %31 = vector.load %arg9[%c0_22, %c0_23] : memref<72x384xf32, #tpu.memory_space<vmem>>, vector<8x384xf32>
    tpu.vector_store %arg9[%c0_22, %c0_23], %30 {strides = array<i32>} : memref<72x384xf32, #tpu.memory_space<vmem>>, vector<8x384xf32>,
    %c18_i32_24 = arith.constant 18 : i32
    %32 = tpu.dynamic_rotate %29 by %c18_i32_24 dim 1 : vector<8x384xf32>, i32 -> vector<8x384xf32>
    %c8_25 = arith.constant 8 : index
    %c0_26 = arith.constant 0 : index
    %33 = vector.load %arg9[%c8_25, %c0_26] : memref<72x384xf32, #tpu.memory_space<vmem>>, vector<8x384xf32>
    tpu.vector_store %arg9[%c8_25, %c0_26], %32 {strides = array<i32>} : memref<72x384xf32, #tpu.memory_space<vmem>>, vector<8x384xf32>,
    %c17_i32_27 = arith.constant 17 : i32
    %34 = tpu.dynamic_rotate %29 by %c17_i32_27 dim 1 : vector<8x384xf32>, i32 -> vector<8x384xf32>
    %c16_28 = arith.constant 16 : index
    %c0_29 = arith.constant 0 : index
    %35 = vector.load %arg9[%c16_28, %c0_29] : memref<72x384xf32, #tpu.memory_space<vmem>>, vector<8x384xf32>
    tpu.vector_store %arg9[%c16_28, %c0_29], %34 {strides = array<i32>} : memref<72x384xf32, #tpu.memory_space<vmem>>, vector<8x384xf32>,
    %c1_i32_30 = arith.constant 1 : i32
    %36 = tpu.dynamic_rotate %29 by %c1_i32_30 dim 1 : vector<8x384xf32>, i32 -> vector<8x384xf32>
    %c24_31 = arith.constant 24 : index
    %c0_32 = arith.constant 0 : index
    %37 = vector.load %arg9[%c24_31, %c0_32] : memref<72x384xf32, #tpu.memory_space<vmem>>, vector<8x384xf32>
    tpu.vector_store %arg9[%c24_31, %c0_32], %36 {strides = array<i32>} : memref<72x384xf32, #tpu.memory_space<vmem>>, vector<8x384xf32>,
    %c32_33 = arith.constant 32 : index
    %c0_34 = arith.constant 0 : index
    %38 = vector.load %arg9[%c32_33, %c0_34] : memref<72x384xf32, #tpu.memory_space<vmem>>, vector<8x384xf32>
    tpu.vector_store %arg9[%c32_33, %c0_34], %29 {strides = array<i32>} : memref<72x384xf32, #tpu.memory_space<vmem>>, vector<8x384xf32>,
    %c383_i32_35 = arith.constant 383 : i32
    %39 = tpu.dynamic_rotate %29 by %c383_i32_35 dim 1 : vector<8x384xf32>, i32 -> vector<8x384xf32>
    %c40 = arith.constant 40 : index
    %c0_36 = arith.constant 0 : index
    %40 = vector.load %arg9[%c40, %c0_36] : memref<72x384xf32, #tpu.memory_space<vmem>>, vector<8x384xf32>
    tpu.vector_store %arg9[%c40, %c0_36], %39 {strides = array<i32>} : memref<72x384xf32, #tpu.memory_space<vmem>>, vector<8x384xf32>,
    %c367_i32_37 = arith.constant 367 : i32
    %41 = tpu.dynamic_rotate %29 by %c367_i32_37 dim 1 : vector<8x384xf32>, i32 -> vector<8x384xf32>
    %c48 = arith.constant 48 : index
    %c0_38 = arith.constant 0 : index
    %42 = vector.load %arg9[%c48, %c0_38] : memref<72x384xf32, #tpu.memory_space<vmem>>, vector<8x384xf32>
    tpu.vector_store %arg9[%c48, %c0_38], %41 {strides = array<i32>} : memref<72x384xf32, #tpu.memory_space<vmem>>, vector<8x384xf32>,
    %c366_i32_39 = arith.constant 366 : i32
    %43 = tpu.dynamic_rotate %29 by %c366_i32_39 dim 1 : vector<8x384xf32>, i32 -> vector<8x384xf32>
    %c56 = arith.constant 56 : index
    %c0_40 = arith.constant 0 : index
    %44 = vector.load %arg9[%c56, %c0_40] : memref<72x384xf32, #tpu.memory_space<vmem>>, vector<8x384xf32>
    tpu.vector_store %arg9[%c56, %c0_40], %43 {strides = array<i32>} : memref<72x384xf32, #tpu.memory_space<vmem>>, vector<8x384xf32>,
    %c365_i32_41 = arith.constant 365 : i32
    %45 = tpu.dynamic_rotate %29 by %c365_i32_41 dim 1 : vector<8x384xf32>, i32 -> vector<8x384xf32>
    %c64 = arith.constant 64 : index
    %c0_42 = arith.constant 0 : index
    %46 = vector.load %arg9[%c64, %c0_42] : memref<72x384xf32, #tpu.memory_space<vmem>>, vector<8x384xf32>
    tpu.vector_store %arg9[%c64, %c0_42], %45 {strides = array<i32>} : memref<72x384xf32, #tpu.memory_space<vmem>>, vector<8x384xf32>,
    %c0_43 = arith.constant 0 : index
    %c0_44 = arith.constant 0 : index
    %47 = vector.load %arg4[%c0_43, %c0_44] : memref<8x72xf32, #tpu.memory_space<vmem>>, vector<8x72xf32>
    %c0_45 = arith.constant 0 : index
    %c0_46 = arith.constant 0 : index
    %48 = vector.load %arg9[%c0_45, %c0_46] : memref<72x384xf32, #tpu.memory_space<vmem>>, vector<72x384xf32>
    %cst_47 = arith.constant dense<0.000000e+00> : vector<8x384xf32>
    %49 = tpu.matmul %47, %48, %cst_47 {dimension_numbers = #tpu.dot_dimension_numbers<[1], [0], [0], [1], [0, 0, 1, 1], [], []>} : vector<8x72xf32>, vector<72x384xf32>, vector<8x384xf32> -> vector<8x384xf32>
    %c0_48 = arith.constant 0 : index
    %c0_49 = arith.constant 0 : index
    %50 = vector.load %arg5[%c0_48, %c0_49] : memref<8x1xf32, #tpu.memory_space<vmem>>, vector<8x1xf32>
    %51 = vector.broadcast %50 : vector<8x1xf32> to vector<8x384xf32>
    %52 = arith.addf %49, %51 : vector<8x384xf32>
    %cst_50 = arith.constant 0.000000e+00 : f32
    %53 = vector.broadcast %cst_50 : f32 to vector<8x384xf32>
    %54 = arith.maximumf %52, %53 : vector<8x384xf32>
    %c0_51 = arith.constant 0 : index
    %c0_52 = arith.constant 0 : index
    %c0_53 = arith.constant 0 : index
    %55 = vector.load %arg7[%c0_51, %c0_52, %c0_53] : memref<1x8x384xf32, #tpu.memory_space<vmem>>, vector<1x8x384xf32>
    %56 = vector.shape_cast %55 : vector<1x8x384xf32> to vector<8x384xf32>
    %57 = vector.shape_cast %54 : vector<8x384xf32> to vector<1x8x384xf32>
    tpu.vector_store %arg7[%c0_51, %c0_52, %c0_53], %57 {strides = array<i32>} : memref<1x8x384xf32, #tpu.memory_space<vmem>>, vector<1x8x384xf32>,
    return
  }
  func.func @transform_0(%arg0: i32) -> (i32, i32, i32) {
    %c0_i32 = arith.constant 0 : i32
    %c0_i32_0 = arith.constant 0 : i32
    %c0_i32_1 = arith.constant 0 : i32
    return %arg0, %c0_i32, %c0_i32_0 : i32, i32, i32
  }
  func.func @transform_1(%arg0: i32) -> (i32, i32) {
    %c0_i32 = arith.constant 0 : i32
    %c0_i32_0 = arith.constant 0 : i32
    %c0_i32_1 = arith.constant 0 : i32
    return %c0_i32, %c0_i32_0 : i32, i32
  }
  func.func @transform_2(%arg0: i32) -> (i32, i32) {
    %c0_i32 = arith.constant 0 : i32
    %c0_i32_0 = arith.constant 0 : i32
    %c0_i32_1 = arith.constant 0 : i32
    return %c0_i32, %c0_i32_0 : i32, i32
  }
  func.func @transform_3(%arg0: i32) -> (i32, i32) {
    %c0_i32 = arith.constant 0 : i32
    %c0_i32_0 = arith.constant 0 : i32
    %c0_i32_1 = arith.constant 0 : i32
    return %c0_i32, %c0_i32_0 : i32, i32
  }
  func.func @transform_4(%arg0: i32) -> (i32, i32) {
    %c0_i32 = arith.constant 0 : i32
    %c0_i32_0 = arith.constant 0 : i32
    %c0_i32_1 = arith.constant 0 : i32
    return %c0_i32, %c0_i32_0 : i32, i32
  }
  func.func @transform_5(%arg0: i32) -> (i32, i32) {
    %c0_i32 = arith.constant 0 : i32
    %c0_i32_0 = arith.constant 0 : i32
    %c0_i32_1 = arith.constant 0 : i32
    return %c0_i32, %c0_i32_0 : i32, i32
  }
  func.func @transform_6(%arg0: i32) -> (i32, i32, i32) {
    %c0_i32 = arith.constant 0 : i32
    %c0_i32_0 = arith.constant 0 : i32
    %c0_i32_1 = arith.constant 0 : i32
    return %arg0, %c0_i32, %c0_i32_0 : i32, i32, i32
  }
}

</mosaic_0001>

<bundles_post_ra>
// kernel: tpu_custom_call.1
= control target key start
LH: loop header
LB: loop body
LE: loop exit
PB: predicated region body
PF: predicated region fallthrough
CT: control target
= control target key end

     0   :  { %11 = vsyncpa [#allocation5], 0  ;;  %s1604_s0 = inlined_call_operand.hbm [shape: f32[2,4,384], index: 0, kind: input, shape index: {}]   ;;  %s1605_s1 = inlined_call_operand.vmem [shape: f32[8,36], index: 1, kind: input, shape index: {}]   ;;  %s1606_s2 = inlined_call_operand.vmem [shape: f32[8,1], index: 2, kind: input, shape index: {}]   ;;  %s1607_s3 = inlined_call_operand.vmem [shape: f32[8,72], index: 3, kind: input, shape index: {}]   ;;  %s1608_s4 = inlined_call_operand.vmem [shape: f32[8,1], index: 4, kind: input, shape index: {}]   ;;  %s1609_s5 = inlined_call_operand.vmem [shape: f32[1,384], index: 5, kind: input, shape index: {}]   ;;  %s1610_s6 = inlined_call_operand.hbm [shape: f32[2,8,384], index: 6, kind: output, shape index: {}]  }
   0x1   :  { %13 = vsyncpa [#allocation5 + $0x1], 0 }
   0x2   :  { %14 = vsyncpa [#allocation6], 0 }
   0x3   :  { %16 = vsyncpa [#allocation6 + $0x1], 0  ;;  %s1258_s21 = smov 0   ;;  %s1260_s22 = smov 0  }
   0x4   :  { %s1262_s23 = smov 0   ;;  %s1264_s24 = smov 0  }
   0x5 LB: > { %s1279_s25 = sadd.s32 4294967295, %s1208_s24   ;;  %s987_s26 = sadd.s32 4294967294, %s1208_s24   ;;  %s1208_s24 = sphi %s1264_s24, %s1626_s24   ;;  %s1204_s23 = sphi %s1262_s23, %s1625_s23   ;;  %s1200_s22 = sphi %s1260_s22, %s1624_s22   ;;  %s1196_s21 = sphi %s1258_s21, %s1623_s21  }
   0x6   : > { %s1283_s27 = sadd.s32 1, %s1208_s24   ;;  %s29_s28 = sadd.s32 1, %s1204_s23 }
   0x7   : > { %s26_s29 = ssub.s32 %s1208_s24, %s1283_s27  ;;  %p36_p0 = scmp.ne.s32.totalorder %s1204_s23, %s1200_s22 }
   0x8   : > { %p27_p1 = scmp.eq.s32.totalorder %s26_s29, 0  ;;  %p37_p2 = scmp.eq.s32.totalorder %s1208_s24, 0 }
   0x9   : > { %p42_p3 = scmp.ne.s32.totalorder %s1200_s22, %s1196_s21  ;;  %p43_p4 = scmp.eq.s32.totalorder %s1279_s25, 0 }
   0xa   : > { %s1295_s30 = scalar_select %p27_p1, %s1204_s23, %s29_s28  }
   0xb   : > { %p38_p5 = por %p37_p2, %p36_p0  ;;  %p1297_p6 = por %p43_p4, %p42_p3 }
   0xc   : > { %p171_p7 = scmp.eq.s32.totalorder %s1279_s25, 1  ;;  %p177_p8 = scmp.eq.s32.totalorder %s987_s26, 1 }
   0xd   : > { %s1613_s7 = scalar_select %p1297_p6, 1, 0 }
   0xe   : > { %p1069_p10 = scmp.lt.s32.totalorder %s1208_s24, 2  ;;  %p1304_p11 = por %p171_p7, %p36_p0 }
   0xf   : > { %p1308_p12 = por %p177_p8, %p42_p3  ;;  %s212_s10 = sand.u32 1, %s1204_s23  }
  0x10   : > { %s1614_s8 = scalar_select %p1304_p11, 1, 0 }
  0x11   : > { %s1615_s9 = scalar_select %p1308_p12, 1, 0 }
  0x12   : > { %s1053_s11 = smul.u32 192, %s1208_s24  ;;  %p1319_p13 = pnand %p1069_p10, %p38_p5 }
  0x13   : > { %s1052_s12 = smul.u32 12, %s212_s10  ;;  %s213_s19 = scalar_lea.sflag [#allocation5], %s212_s10 }
  0x14   : > { %s1317_s15 = scalar_lea.hbm %s1604_s0, %s1053_s11  ;;  %p1118_p3 = pneg %p1319_p13 }
  0x15   : > { %s216_s17 = scalar_lea.vmem [#allocation4], %s1052_s12  ;;  %s1116_s20 = scalar_lea.hbm %s1317_s15, 192 }
  0x16   : > { %s224_s18 = sshll.u32 %s216_s17, 4  ;;  %p1117_p2 = scmp.ne.s32.totalorder %s1317_s15, %s1116_s20  ;;  %s225_s18 = int_to_ptr.vmem [resolvable:$true] %s224_s18 }
  0x17   : > { %s1121_s29 = scalar_lea.hbm %s1604_s0, 384  ;;  %p1122_p5 = scmp.lt.s32.totalorder %s1317_s15, %s1604_s0 }
  0x18   : > { %p1119_p4 = pnand %p1118_p3, %p1117_p2  ;;  %p1123_p8 = scmp.lt.s32.totalorder %s1121_s29, %s1116_s20 }
  0x1a   : > { %p1120_p7 = pneg %p1119_p4  ;;  %p1124_p10 = por %p1123_p8, %p1122_p5 }
  0x1c   : > { %p1125_p9 = pnand %p1124_p10, %p1120_p7 }
  0x1e   : > { %1128 = shalt.err (!%p1125_p9)
}
  0x1f   : > { %s1129_s12 = scalar_lea.vmem %s225_s18, 192  ;;  %s1210_s10 = smov [#allocation4]  }
  0x20   : > { %p1130_p0 = scmp.ne.s32.totalorder %s225_s18, %s1129_s12  ;;  %s1134_s14 = sshll.u32 %s1210_s10, 4  ;;  %s1135_s14 = int_to_ptr.vmem [resolvable:$false] %s1134_s14 }
  0x21   : > { %s1136_s17 = scalar_lea.vmem %s1135_s14, 384  ;;  %p1137_p2 = scmp.lt.s32.totalorder %s225_s18, %s1135_s14 }
  0x22   : > { %p1132_p1 = pnand %p1130_p0, %p1118_p3  ;;  %p1138_p4 = scmp.lt.s32.totalorder %s1136_s17, %s1129_s12 }
  0x24   : > { %p1133_p12 = pneg %p1132_p1  ;;  %p1139_p11 = por %p1138_p4, %p1137_p2 }
  0x26   : > { %p1140_p6 = pnand %p1139_p11, %p1133_p12 }
  0x28   : > { %1143 = shalt.err (!%p1140_p6)
}
  0x29   : > { %1064 = dma.hbm_to_vmem [thread:$0]  (!%p1319_p13), %s1317_s15, 192, %s225_s18, %s213_s19  }
  0x2a   : > { %p1617_p9 = scmp.lt.s32.totalorder %s1208_s24, 3  ;;  %p1618_p7 = scmp.ge.s32.totalorder %s1208_s24, 1 }
  0x2c   : > { %p230_p5 = pnand %p1618_p7, %p1617_p9 }
  0x2d   : > { %s1344_s20 = sand.u32 (!%p230_p5), 1, %s1200_s22   ;;  %p1619_p6 = scmp.ne.s32.totalorder (!%p230_p5), %s1613_s7, 0 }
  0x2e   : > { %233 = sbr.rel (%p230_p5) target bundleno = 800 (0x320), region = 44  ;;  %s236_s28 = scalar_lea.sflag (!%p230_p5), [#allocation5], %s1344_s20 }
  0x2f   : > { %s1054_s26 = smul.u32 (!%p230_p5), 12, %s1344_s20 }
  0x31   : > { %s239_s29 = scalar_lea.vmem (!%p230_p5), [#allocation4], %s1054_s26 }
  0x33   : > { %1187 = dma.done.wait (%p1619_p6), %s236_s28, 192  }
  0x34   : > { %1189 = vsyncadd (%p1619_p6), %s236_s28, 4294967104  ;;  %v269_v0 = vld [vmem:[%s239_s29 + $0x8] sm:$0xf]  ;;  %v268_v1 = vld [vmem:[%s239_s29] sm:$0xff]  ;;  %v1211_v2 = vmov 0.0   ;;  %s1212_s15 = smov 109   ;;  %v279_v6 = vlaneseq }
  0x35   : > { %1018 = vmatprep.subr.mxu1 %v1211_v2  ;;  %518 = vmatprep.mubr.f32.mxu0 %v1211_v2  ;;  %347 = vst [vmem:[#allocation2 + $0x40] sm:$0xf] %v269_v0  ;;  %s1213_s16 = smov 110   ;;  %345 = vst [vmem:[#allocation2 + $0x8] sm:$0xf] %v268_v1  ;;  %v271_v3 = vcombine.high %v268_v1, %v268_v1  ;;  %s1214_s7 = smov 127  }
  0x36   : > { %409 = vrot.lane.b32.xlu1 %v269_v0, %s1212_s15  ;;  %387 = vrot.lane.b32.xlu0 %v269_v0, %s1213_s16  ;;  %s1215_s18 = smov 111   ;;  %s1216_s19 = smov 1   ;;  %vm1220_vm0 = vmmov 0   ;;  %v1221_v4 = vmov 0   ;;  %v434_v5 = vld [vmem:[%s1606_s2] sm:$0xff]  ;;  %v1384_v7 = vand.u32 127, %v279_v6 }
  0x37   : > { %346 = vst [vmem:[#allocation2 + $0x48] sm:$0xf] %v271_v3  ;;  %s1217_s11 = smov 18   ;;  %s1218_s13 = smov 17   ;;  %1028 = vmatprep.mubr.msk.f32.mxu1 %vm1220_vm0, %v1211_v2  ;;  %1114 = vset.pattern.permute.xlu0 %v1221_v4  ;;  %vm444_vm4 = vcmask 1043456   ;;  %vm440_vm10 = vcmask 293888  }
  0x38   : > { %s1219_s12 = smov 19   ;;  %vm411_vm1 = vcmp.lt.s32.totalorder %v1384_v7, 109  ;;  %vm389_vm2 = vcmp.lt.s32.totalorder %v1384_v7, 110  ;;  %vm354_vm3 = vcmp.lt.s32.totalorder %v1384_v7, 127  ;;  %vm376_vm5 = vcmp.lt.s32.totalorder %v1384_v7, 111  ;;  %s903_s26 = scalar_lea.sflag [#allocation6], %s1344_s20 }
  0x39   : > { %vm329_vm6 = vcmp.lt.s32.totalorder %v1384_v7, 1  ;;  %vm294_vm7 = vcmp.lt.s32.totalorder %v1384_v7, 18  ;;  %vm316_vm8 = vcmp.lt.s32.totalorder %v1384_v7, 17  ;;  %vm281_vm9 = vcmp.lt.s32.totalorder %v1384_v7, 19  ;;  %p1620_p12 = scmp.ne.s32.totalorder %s1614_s8, 0 }
  0x3a   : > { %405 = vrot.lane.b32.xlu1 %v268_v1, %s1212_s15  ;;  %383 = vrot.lane.b32.xlu0 %v268_v1, %s1213_s16  ;;  %vm751_vm11 = vcmask 588800  }
  0x3e   : > { %407 = vrot.lane.b32.xlu1 %v271_v3, %s1212_s15  ;;  %385 = vrot.lane.b32.xlu0 %v271_v3, %s1213_s16 }
  0x42   : > { %352 = vrot.lane.b32.xlu1 %v269_v0, %s1214_s7  ;;  %350 = vrot.lane.b32.xlu0 %v271_v3, %s1214_s7 }
  0x46   : > { %374 = vrot.lane.b32.xlu1 %v269_v0, %s1215_s18  ;;  %372 = vrot.lane.b32.xlu0 %v271_v3, %s1215_s18 }
  0x4a   : > { %370 = vrot.lane.b32.xlu1 %v268_v1, %s1215_s18  ;;  %348 = vrot.lane.b32.xlu0 %v268_v1, %s1214_s7 }
  0x4e   : > { %325 = vrot.lane.b32.xlu1 %v271_v3, %s1216_s19  ;;  %323 = vrot.lane.b32.xlu0 %v268_v1, %s1216_s19 }
  0x52   : > { %288 = vrot.lane.b32.xlu1 %v268_v1, %s1217_s11  ;;  %327 = vrot.lane.b32.xlu0 %v269_v0, %s1216_s19 }
  0x56   : > { %310 = vrot.lane.b32.xlu1 %v268_v1, %s1218_s13  ;;  %290 = vrot.lane.b32.xlu0 %v271_v3, %s1217_s11 }
  0x5a   : > { %292 = vrot.lane.b32.xlu1 %v269_v0, %s1217_s11  ;;  %312 = vrot.lane.b32.xlu0 %v271_v3, %s1218_s13 }
  0x5e   : > { %273 = vrot.lane.b32.xlu1 %v268_v1, %s1219_s12  ;;  %314 = vrot.lane.b32.xlu0 %v269_v0, %s1218_s13 }
  0x62   : > { %277 = vrot.lane.b32.xlu1 %v269_v0, %s1219_s12  ;;  %275 = vrot.lane.b32.xlu0 %v271_v3, %s1219_s12 }
  0x66   : > { %437 = vperm.xlu0 %1114, %v434_v5  }
  0xa8   : > { %v410_v8 = vpop.permute.xlu1 %409  ;;  %v388_v9 = vpop.permute.xlu0 %387 }
  0xac   : > { %v406_v10 = vpop.permute.xlu1 %405  ;;  %v384_v11 = vpop.permute.xlu0 %383 }
  0xad   : > { %v414_v12 = vsel %vm411_vm1, %v410_v8, %v406_v10  ;;  %v392_v13 = vsel %vm389_vm2, %v388_v9, %v384_v11 }
  0xae   : > { %417 = vst [vmem:[#allocation2 + $0x28] sm:$0xf] %v414_v12  ;;  %v398_v14 = vrot.slane %v392_v13, 4 }
  0xb0   : > { %404 = vst [vmem:[#allocation2 + $0x38] sm:$0xf0] %v398_v14  ;;  %v408_v15 = vpop.permute.xlu1 %407  ;;  %v386_v16 = vpop.permute.xlu0 %385 }
  0xb1   : > { %v412_v17 = vsel %vm411_vm1, %v408_v15, %v410_v8  ;;  %v413_v18 = vsel %vm411_vm1, %v406_v10, %v408_v15  ;;  %v390_v19 = vsel %vm389_vm2, %v386_v16, %v388_v9  ;;  %v391_v20 = vsel %vm389_vm2, %v384_v11, %v386_v16 }
  0xb2   : > { %415 = vst [vmem:[#allocation2 + $0x60] sm:$0xf] %v413_v18  ;;  %416 = vst [vmem:[#allocation2 + $0x70] sm:$0xf] %v412_v17  ;;  %v396_v21 = vrot.slane %v391_v20, 4  ;;  %v397_v22 = vrot.slane %v390_v19, 4 }
  0xb3   : > { %v418_v19 = vld [vmem:[%s1605_s1] sm:$0xff] }
  0xb4   : > { %402 = vst [vmem:[#allocation2 + $0x20] sm:$0xf0] %v396_v21  ;;  %403 = vst [vmem:[#allocation2 + $0x10] sm:$0xf0] %v397_v22  ;;  %v353_v23 = vpop.permute.xlu1 %352  ;;  %v351_v24 = vpop.permute.xlu0 %350 }
  0xb5   : > { %v355_v25 = vsel %vm354_vm3, %v351_v24, %v353_v23  ;;  %v433_v26 = vld [vmem:[#allocation2 + $0x28] sm:$0xf] }
  0xb6   : > { %v362_v27 = vrot.slane %v355_v25, 4  ;;  %1019 = vmatpush3.msk.msra.mxu1 %vm444_vm4, %v433_v26  ;;  %v598_v25 = vld [vmem:[%s1609_s5] sm:$0x7] }
  0xb7   : > { %1020 = vmatprep.subr.mxu1 %v1211_v2 }
  0xb8   : > { %368 = vst [vmem:[#allocation2 + $0x48] sm:$0xf0] %v362_v27  ;;  %v375_v28 = vpop.permute.xlu1 %374  ;;  %v373_v29 = vpop.permute.xlu0 %372 }
  0xb9   : > { %v377_v30 = vsel %vm376_vm5, %v373_v29, %v375_v28  ;;  %v432_v31 = vld [vmem:[#allocation2 + $0x70] sm:$0xf]  ;;  %v431_v32 = vld [vmem:[#allocation2 + $0x60] sm:$0xf] }
  0xba   : > { %381 = vst [vmem:[#allocation2 + $0x10] sm:$0xf] %v377_v30  ;;  %992 = vmatprep.subr.msk.mxu0 %vm444_vm4, %v432_v31 }
  0xbb   : > { %993 = vmatpush1.msk.msra.mxu0 %vm444_vm4, %v431_v32 }
  0xbc   : > { %v371_v33 = vpop.permute.xlu1 %370  ;;  %v349_v34 = vpop.permute.xlu0 %348 }
  0xbd   : > { %v378_v35 = vsel %vm376_vm5, %v371_v33, %v373_v29  ;;  %v379_v36 = vsel %vm376_vm5, %v375_v28, %v371_v33  ;;  %v356_v37 = vsel %vm354_vm3, %v349_v34, %v351_v24  ;;  %v357_v38 = vsel %vm354_vm3, %v353_v23, %v349_v34 }
  0xbe   : > { %380 = vst [vmem:[#allocation2 + $0x20] sm:$0xf] %v378_v35  ;;  %382 = vst [vmem:[#allocation2 + $0x38] sm:$0xf] %v379_v36  ;;  %v361_v39 = vrot.slane %v356_v37, 4  ;;  %v363_v40 = vrot.slane %v357_v38, 4 }
  0xbf   : > { %v426_v54 = vld [vmem:[#allocation2 + $0x48] sm:$0xff]  ;;  %v601_v23 = vshrl.u32 %v279_v6, 7 }
  0xc0   : > { %367 = vst [vmem:[#allocation2 + $0x8] sm:$0xf0] %v361_v39  ;;  %369 = vst [vmem:[#allocation2 + $0x40] sm:$0xf0] %v363_v40  ;;  %v326_v41 = vpop.permute.xlu1 %325  ;;  %v324_v42 = vpop.permute.xlu0 %323 }
  0xc1   : > { %v331_v43 = vsel %vm329_vm6, %v324_v42, %v326_v41  ;;  %v429_v44 = vld [vmem:[#allocation2 + $0x10] sm:$0xff]  ;;  %v610_v24 = vsub.s32 2, %v601_v23  ;;  %v602_v35 = vsub.s32 0, %v601_v23  ;;  %v606_v40 = vsub.s32 1, %v601_v23 }
  0xc2   : > { %v337_v45 = vrot.slane %v331_v43, 4  ;;  %478 = vmatprep.subr.mxu0 %v429_v44  ;;  %v745_v44 = vld [vmem:[%s1608_s4] sm:$0xff] }
  0xc3   : > { %v611_v28 = vrot.slane %v598_v25, %v610_v24  ;;  %v603_v36 = vrot.slane %v598_v25, %v602_v35 }
  0xc4   : > { %343 = vst [vmem:[#allocation2 + $0x50] sm:$0xf0] %v337_v45  ;;  %v289_v46 = vpop.permute.xlu1 %288  ;;  %v328_v47 = vpop.permute.xlu0 %327 }
  0xc5   : > { %v330_v48 = vsel %vm329_vm6, %v326_v41, %v328_v47  ;;  %v332_v49 = vsel %vm329_vm6, %v328_v47, %v324_v42  ;;  %v428_v50 = vld [vmem:[#allocation2 + $0x20] sm:$0xff]  ;;  %v430_v51 = vld [vmem:[#allocation2 + $0x38] sm:$0xff]  ;;  %v607_v42 = vrot.slane %v598_v25, %v606_v40 }
  0xc6   : > { %v336_v52 = vrot.slane %v332_v49, 4  ;;  %v338_v53 = vrot.slane %v330_v48, 4  ;;  %479 = vmatpush1.msra.mxu0 %v428_v50  ;;  %1021 = vmatpush3.msra.mxu1 %v430_v51 }
  0xc7   : > { %480 = vmatprep.subr.mxu0 %v426_v54  ;;  %1022 = vmatprep.subr.mxu1 %v1211_v2  ;;  %v427_v55 = vld [vmem:[#allocation2 + $0x40] sm:$0xff]  ;;  %v425_v56 = vld [vmem:[#allocation2 + $0x8] sm:$0xff] }
  0xc8   : > { %342 = vst [vmem:[#allocation2 + $0x18] sm:$0xf0] %v336_v52  ;;  %344 = vst [vmem:[#allocation2 + $0x68] sm:$0xf0] %v338_v53  ;;  %v311_v57 = vpop.permute.xlu1 %310  ;;  %1023 = vmatpush3.msra.mxu1 %v427_v55  ;;  %v291_v58 = vpop.permute.xlu0 %290  ;;  %481 = vmatpush1.msra.mxu0 %v425_v56 }
  0xc9   : > { %v296_v59 = vsel %vm294_vm7, %v289_v46, %v291_v58  ;;  %1024 = vmatprep.subr.mxu1 %v1211_v2 }
  0xca   : > { %v302_v60 = vrot.slane %v296_v59, 4 }
  0xcc   : > { %308 = vst [vmem:[#allocation2] sm:$0xf0] %v302_v60  ;;  %v293_v61 = vpop.permute.xlu1 %292  ;;  %v313_v62 = vpop.permute.xlu0 %312 }
  0xcd   : > { %v295_v63 = vsel %vm294_vm7, %v291_v58, %v293_v61  ;;  %v297_v0 = vsel %vm294_vm7, %v293_v61, %v289_v46  ;;  %v318_v1 = vsel %vm316_vm8, %v311_v57, %v313_v62 }
  0xce   : > { %v301_v3 = vrot.slane %v297_v0, 4  ;;  %v303_v4 = vrot.slane %v295_v63, 4  ;;  %321 = vst [vmem:[#allocation2 + $0x50] sm:$0xf] %v318_v1 }
  0xd0   : > { %307 = vst [vmem:[#allocation2 + $0x30] sm:$0xf0] %v301_v3  ;;  %309 = vst [vmem:[#allocation2 + $0x58] sm:$0xf0] %v303_v4  ;;  %v274_v5 = vpop.permute.xlu1 %273  ;;  %v315_v8 = vpop.permute.xlu0 %314 }
  0xd1   : > { %v317_v9 = vsel %vm316_vm8, %v313_v62, %v315_v8  ;;  %v319_v10 = vsel %vm316_vm8, %v315_v8, %v311_v57 }
  0xd2   : > { %320 = vst [vmem:[#allocation2 + $0x18] sm:$0xf] %v319_v10  ;;  %322 = vst [vmem:[#allocation2 + $0x68] sm:$0xf] %v317_v9 }
  0xd4   : > { %v278_v11 = vpop.permute.xlu1 %277  ;;  %v276_v12 = vpop.permute.xlu0 %275 }
  0xd5   : > { %v284_v13 = vsel %vm281_vm9, %v278_v11, %v274_v5  ;;  %v282_v14 = vsel %vm281_vm9, %v276_v12, %v278_v11  ;;  %v283_v15 = vsel %vm281_vm9, %v274_v5, %v276_v12  ;;  %v423_v16 = vld [vmem:[#allocation2 + $0x50] sm:$0xff] }
  0xd6   : > { %285 = vst [vmem:[#allocation2 + $0x30] sm:$0xf] %v284_v13  ;;  %286 = vst [vmem:[#allocation2] sm:$0xf] %v283_v15  ;;  %482 = vmatprep.subr.mxu0 %v423_v16 }
  0xd7   : > { %287 = vst [vmem:[#allocation2 + $0x58] sm:$0xf] %v282_v14 }
  0xd9   : > { %v422_v17 = vld [vmem:[#allocation2 + $0x18] sm:$0xff]  ;;  %v424_v18 = vld [vmem:[#allocation2 + $0x68] sm:$0xff] }
  0xda   : > { %483 = vmatpush1.msra.mxu0 %v422_v17  ;;  %1025 = vmatpush3.msra.mxu1 %v424_v18 }
  0xdb   : > { %1026 = vmatprep.subr.mxu1 %v1211_v2 }
  0xdd   : > { %v420_v20 = vld [vmem:[#allocation2] sm:$0xff]  ;;  %v419_v22 = vld [vmem:[#allocation2 + $0x30] sm:$0xff] }
  0xde   : > { %v421_v21 = vld [vmem:[#allocation2 + $0x58] sm:$0xff]  ;;  %484 = vmatprep.subr.mxu0 %v420_v20 }
  0xdf   : > { %1027 = vmatpush3.msra.mxu1 %v421_v21  ;;  %485 = vmatpush1.msra.mxu0 %v419_v22 }
  0xe0   : > { %1029 = vmatmul.mubr.msk.f32.vlgmr.msra.gmra.mxu1 %vm440_vm10, %v418_v19  ;;  %994 = vmatmul.mubr.msk.f32.vlgmr.msra.gmra.mxu0 %vm440_vm10, %v418_v19 }
  0xe1   : > { %1031 = vmatprep.subr.mxu1 %v1211_v2  ;;  %819 = vmatprep.mubr.f32.mxu0 %v1211_v2  ;;  %v438_v26 = vpop.permute.xlu0 %437 }
  0xe2   : > { %1049 = vmatprep.mubr.msk.f32.mxu1 %vm1220_vm0, %v1211_v2 }
 0x1a0   : > { %v591_v27 = vpop.f32.mrf.mxu1  ;;  %v520_v33 = vpop.f32.mrf.mxu0 }
 0x1a1   : > { %v592_v29 = vadd.f32 %v591_v27, %v438_v26  ;;  %v521_v34 = vadd.f32 %v520_v33, %v438_v26 }
 0x1a2   : > { %v1030_v30 = vpop.f32.mrf.mxu1  ;;  %v522_v38 = vpop.f32.mrf.mxu0 }
 0x1a3   : > { %v597_v31 = vmax.f32 %v592_v29, 0.0  ;;  %v595_v6 = vmax.f32 %v521_v34, 0.0  ;;  %v523_v39 = vadd.f32 %v522_v38, %v438_v26  ;;  %v717_v30 = vld [vmem:[%s1607_s3] sm:$0xff] }
 0x1a5   : > { %v617_v32 = vmul.f32 %v611_v28, %v597_v31  ;;  %v1466_v37 = vmul.f32 %v603_v36, %v595_v6  ;;  %v596_v41 = vmax.f32 %v523_v39, 0.0 }
 0x1a7   : > { %697 = vrot.lane.b32.xlu0 %v617_v32, %s1213_s16  ;;  %709 = vrot.lane.b32.xlu1 %v617_v32, %s1212_s15  ;;  %v1480_v43 = vmul.f32 %v607_v42, %v596_v41 }
 0x1ab   : > { %673 = vrot.lane.b32.xlu0 %v617_v32, %s1214_s7  ;;  %685 = vrot.lane.b32.xlu1 %v617_v32, %s1215_s18 }
 0x1af   : > { %658 = vrot.lane.b32.xlu0 %v617_v32, %s1216_s19  ;;  %646 = vrot.lane.b32.xlu1 %v617_v32, %s1218_s13 }
 0x1b3   : > { %693 = vrot.lane.b32.xlu1 %v1466_v37, %s1213_s16  ;;  %705 = vrot.lane.b32.xlu0 %v1466_v37, %s1212_s15 }
 0x1b7   : > { %669 = vrot.lane.b32.xlu1 %v1466_v37, %s1214_s7  ;;  %681 = vrot.lane.b32.xlu0 %v1466_v37, %s1215_s18 }
 0x1bb   : > { %642 = vrot.lane.b32.xlu1 %v1466_v37, %s1218_s13  ;;  %654 = vrot.lane.b32.xlu0 %v1466_v37, %s1216_s19 }
 0x1bf   : > { %707 = vrot.lane.b32.xlu1 %v1480_v43, %s1212_s15  ;;  %630 = vrot.lane.b32.xlu0 %v1466_v37, %s1217_s11 }
 0x1c3   : > { %695 = vrot.lane.b32.xlu1 %v1480_v43, %s1213_s16  ;;  %683 = vrot.lane.b32.xlu0 %v1480_v43, %s1215_s18 }
 0x1c7   : > { %618 = vrot.lane.b32.xlu1 %v1466_v37, %s1219_s12  ;;  %634 = vrot.lane.b32.xlu0 %v617_v32, %s1217_s11 }
 0x1cb   : > { %671 = vrot.lane.b32.xlu1 %v1480_v43, %s1214_s7  ;;  %644 = vrot.lane.b32.xlu0 %v1480_v43, %s1218_s13 }
 0x1cf   : > { %656 = vrot.lane.b32.xlu1 %v1480_v43, %s1216_s19  ;;  %620 = vrot.lane.b32.xlu0 %v1480_v43, %s1219_s12  ;;  %s1055_s19 = smul.u32 24, %s1344_s20 }
 0x1d1   : > { %s267_s13 = scalar_lea.vmem [#allocation7], %s1055_s19 }
 0x1d3   : > { %632 = vrot.lane.b32.xlu1 %v1480_v43, %s1217_s11  ;;  %748 = vperm.xlu0 %1114, %v745_v44   ;;  %s1056_s11 = smul.u32 384, %s1279_s25  ;;  %s1222_s25 = smov [#allocation7]  }
 0x1d4   : > { %s1148_s29 = sshll.u32 %s1222_s25, 4  ;;  %s1149_s29 = int_to_ptr.vmem [resolvable:$false] %s1148_s29 }
 0x1d5   : > { %s915_s17 = scalar_lea.hbm %s1610_s6, %s1056_s11  ;;  %s1150_s15 = scalar_lea.vmem %s1149_s29, 768 }
 0x1d7   : > { %622 = vrot.lane.b32.xlu1 %v617_v32, %s1219_s12  ;;  %s917_s12 = sshll.u32 %s267_s13, 4  ;;  %s918_s12 = int_to_ptr.vmem [resolvable:$true] %s917_s12 }
 0x1d8   : > { %s1144_s28 = scalar_lea.vmem %s918_s12, 384  ;;  %p1151_p1 = scmp.lt.s32.totalorder %s918_s12, %s1149_s29 }
 0x1d9   : > { %p1145_p11 = scmp.ne.s32.totalorder %s918_s12, %s1144_s28  ;;  %p1152_p3 = scmp.lt.s32.totalorder %s1150_s15, %s1144_s28 }
 0x1db   : > { %p1146_p13 = pnand %p1145_p11, %p1620_p12  ;;  %p1153_p8 = por %p1152_p3, %p1151_p1 }
 0x1dd   : > { %p1147_p0 = pneg %p1146_p13 }
 0x1df   : > { %p1154_p10 = pnand %p1153_p8, %p1147_p0 }
 0x219   : > { %v698_v45 = vpop.permute.xlu0 %697  ;;  %v710_v46 = vpop.permute.xlu1 %709 }
 0x21d   : > { %v674_v47 = vpop.permute.xlu0 %673  ;;  %v686_v48 = vpop.permute.xlu1 %685 }
 0x221   : > { %v659_v49 = vpop.permute.xlu0 %658  ;;  %v647_v50 = vpop.permute.xlu1 %646 }
 0x225   : > { %v694_v51 = vpop.permute.xlu1 %693  ;;  %v706_v52 = vpop.permute.xlu0 %705 }
 0x226   : > { %v713_v53 = vsel %vm411_vm1, %v710_v46, %v706_v52  ;;  %v701_v54 = vsel %vm389_vm2, %v698_v45, %v694_v51 }
 0x227   : > { %1032 = vmatpush3.msra.mxu1 %v713_v53 }
 0x228   : > { %1033 = vmatprep.subr.mxu1 %v1211_v2 }
 0x229   : > { %v670_v55 = vpop.permute.xlu1 %669  ;;  %1034 = vmatpush3.msra.mxu1 %v701_v54  ;;  %v682_v56 = vpop.permute.xlu0 %681 }
 0x22a   : > { %v689_v57 = vsel %vm376_vm5, %v686_v48, %v682_v56  ;;  %1035 = vmatprep.subr.mxu1 %v1211_v2  ;;  %v677_v58 = vsel %vm354_vm3, %v674_v47, %v670_v55 }
 0x22b   : > { %1036 = vmatpush3.msra.mxu1 %v689_v57 }
 0x22c   : > { %1037 = vmatprep.subr.mxu1 %v1211_v2 }
 0x22d   : > { %v643_v59 = vpop.permute.xlu1 %642  ;;  %1038 = vmatpush3.msra.mxu1 %v677_v58  ;;  %v655_v60 = vpop.permute.xlu0 %654 }
 0x22e   : > { %1039 = vmatprep.subr.mxu1 %v1211_v2  ;;  %v662_v19 = vsel %vm329_vm6, %v659_v49, %v655_v60  ;;  %v650_v22 = vsel %vm316_vm8, %v647_v50, %v643_v59 }
 0x22f   : > { %1040 = vmatpush3.msra.mxu1 %v617_v32 }
 0x230   : > { %1041 = vmatprep.subr.mxu1 %v1211_v2 }
 0x231   : > { %v708_v61 = vpop.permute.xlu1 %707  ;;  %v631_v62 = vpop.permute.xlu0 %630 }
 0x232   : > { %v712_v63 = vsel %vm411_vm1, %v706_v52, %v708_v61  ;;  %v711_v0 = vsel %vm411_vm1, %v708_v61, %v710_v46 }
 0x233   : > { %769 = vmatprep.subr.mxu0 %v711_v0 }
 0x234   : > { %770 = vmatpush1.msra.mxu0 %v712_v63 }
 0x235   : > { %v696_v1 = vpop.permute.xlu1 %695  ;;  %v684_v3 = vpop.permute.xlu0 %683 }
 0x236   : > { %v700_v4 = vsel %vm389_vm2, %v694_v51, %v696_v1  ;;  %v699_v5 = vsel %vm389_vm2, %v696_v1, %v698_v45  ;;  %v687_v8 = vsel %vm376_vm5, %v684_v3, %v686_v48  ;;  %v688_v9 = vsel %vm376_vm5, %v682_v56, %v684_v3 }
 0x237   : > { %771 = vmatprep.subr.mxu0 %v699_v5 }
 0x238   : > { %772 = vmatpush1.msra.mxu0 %v700_v4 }
 0x239   : > { %v619_v10 = vpop.permute.xlu1 %618  ;;  %773 = vmatprep.subr.mxu0 %v687_v8  ;;  %v635_v11 = vpop.permute.xlu0 %634 }
 0x23a   : > { %774 = vmatpush1.msra.mxu0 %v688_v9  ;;  %v638_v27 = vsel %vm294_vm7, %v635_v11, %v631_v62 }
 0x23d   : > { %v672_v12 = vpop.permute.xlu1 %671  ;;  %v645_v15 = vpop.permute.xlu0 %644 }
 0x23e   : > { %v676_v13 = vsel %vm354_vm3, %v670_v55, %v672_v12  ;;  %v675_v14 = vsel %vm354_vm3, %v672_v12, %v674_v47  ;;  %v648_v20 = vsel %vm316_vm8, %v645_v15, %v647_v50  ;;  %v649_v21 = vsel %vm316_vm8, %v643_v59, %v645_v15 }
 0x23f   : > { %775 = vmatprep.subr.mxu0 %v675_v14 }
 0x240   : > { %776 = vmatpush1.msra.mxu0 %v676_v13 }
 0x241   : > { %v657_v16 = vpop.permute.xlu1 %656  ;;  %777 = vmatprep.subr.mxu0 %v1480_v43  ;;  %v621_v23 = vpop.permute.xlu0 %620 }
 0x242   : > { %v660_v17 = vsel %vm329_vm6, %v657_v16, %v659_v49  ;;  %778 = vmatpush1.msra.mxu0 %v1466_v37  ;;  %v661_v18 = vsel %vm329_vm6, %v655_v60, %v657_v16  ;;  %v625_v28 = vsel %vm281_vm9, %v619_v10, %v621_v23 }
 0x243   : > { %779 = vmatprep.subr.mxu0 %v661_v18  ;;  %1042 = vmatpush3.msra.mxu1 %v660_v17 }
 0x244   : > { %780 = vmatpush1.msra.mxu0 %v662_v19  ;;  %1043 = vmatprep.subr.mxu1 %v1211_v2 }
 0x245   : > { %v633_v24 = vpop.permute.xlu1 %632  ;;  %781 = vmatprep.subr.mxu0 %v649_v21  ;;  %1044 = vmatpush3.msra.mxu1 %v648_v20 }
 0x246   : > { %v636_v25 = vsel %vm294_vm7, %v633_v24, %v635_v11  ;;  %782 = vmatpush1.msra.mxu0 %v650_v22  ;;  %1045 = vmatprep.subr.mxu1 %v1211_v2  ;;  %v637_v26 = vsel %vm294_vm7, %v631_v62, %v633_v24 }
 0x247   : > { %783 = vmatprep.subr.mxu0 %v637_v26  ;;  %1046 = vmatpush3.msra.mxu1 %v636_v25 }
 0x248   : > { %784 = vmatpush1.msra.mxu0 %v638_v27  ;;  %1047 = vmatprep.subr.mxu1 %v1211_v2 }
 0x249   : > { %v623_v29 = vpop.permute.xlu1 %622  ;;  %785 = vmatprep.subr.mxu0 %v625_v28 }
 0x24a   : > { %v624_v31 = vsel %vm281_vm9, %v621_v23, %v623_v29  ;;  %v626_v32 = vsel %vm281_vm9, %v623_v29, %v619_v10 }
 0x24b   : > { %786 = vmatpush1.msra.mxu0 %v626_v32  ;;  %1048 = vmatpush3.msra.mxu1 %v624_v31 }
 0x24c   : > { %997 = vmatmul.mubr.msk.f32.vlgmr.msra.gmra.mxu0 %vm751_vm11, %v717_v30  ;;  %1050 = vmatmul.mubr.msk.f32.vlgmr.msra.gmra.mxu1 %vm751_vm11, %v717_v30 }
 0x24e   : > { %v749_v2 = vpop.permute.xlu0 %748 }
 0x30c   : > { %v821_v33 = vpop.f32.mrf.mxu0  ;;  %v892_v34 = vpop.f32.mrf.mxu1 }
 0x30d   : > { %v822_v35 = vadd.f32 %v821_v33, %v749_v2  ;;  %v893_v6 = vadd.f32 %v892_v34, %v749_v2 }
 0x30e   : > { %v823_v36 = vpop.f32.mrf.mxu0  ;;  %v1051_v37 = vpop.f32.mrf.mxu1 }
 0x30f   : > { %v896_v38 = vmax.f32 %v822_v35, 0.0  ;;  %v898_v7 = vmax.f32 %v893_v6, 0.0  ;;  %v824_v39 = vadd.f32 %v823_v36, %v749_v2 }
 0x311   : > { %899 = vst [vmem:[%s267_s13] sm:$0xff] %v896_v38  ;;  %901 = vst [vmem:[%s267_s13 + $0x10] sm:$0xff] %v898_v7  ;;  %v897_v40 = vmax.f32 %v824_v39, 0.0 }
 0x313   : > { %900 = vst [vmem:[%s267_s13 + $0x8] sm:$0xff] %v897_v40 }
 0x314   : > { %1157 = shalt.err (!%p1154_p10)
}
 0x315   : > { %s1158_s16 = scalar_lea.hbm %s915_s17, 384  ;;  %s1162_s18 = scalar_lea.hbm %s1610_s6, 768 }
 0x316   : > { %p1159_p2 = scmp.ne.s32.totalorder %s915_s17, %s1158_s16  ;;  %p1163_p7 = scmp.lt.s32.totalorder %s915_s17, %s1610_s6 }
 0x317   : > { %p1164_p5 = scmp.lt.s32.totalorder %s1162_s18, %s1158_s16 }
 0x318   : > { %p1160_p4 = pnand %p1159_p2, %p1620_p12 }
 0x319   : > { %p1165_p6 = por %p1164_p5, %p1163_p7 }
 0x31a   : > { %p1161_p9 = pneg %p1160_p4 }
 0x31c   : > { %p1166_p11 = pnand %p1165_p6, %p1161_p9 }
 0x31e   : > { %1169 = shalt.err (!%p1166_p11)
}
 0x31f   : > { %1059 = dma.vmem_to_hbm [thread:$0]  (%p1620_p12), %s918_s12, 384, %s915_s17, %s903_s26  }
 0x320 PF: > { %s929_s13 = sand.u32 1, %s1196_s21   ;;  %p1621_p13 = scmp.ne.s32.totalorder %s1615_s9, 0 }
 0x321   : > { %p1622_p0 = scmp.ge.s32.totalorder %s1208_s24, 2  ;;  %s930_s10 = scalar_lea.sflag [#allocation6], %s929_s13 }
 0x323   : > { %p1066_p1 = pnand %p1622_p0, %p1621_p13 }
 0x325   : > { %p1067_p3 = pneg %p1066_p1 }
 0x327   : > { %1191 = dma.done.wait (%p1067_p3), %s930_s10, 384  }
 0x328   : > { %1193 = vsyncadd (%p1067_p3), %s930_s10, 4294966912  ;;  %p19_p8 = scmp.ge.s32.totalorder %s1283_s27, 4   ;;  %s1623_s21 = smov %s1200_s22 }
 0x329   : > { %s1624_s22 = smov %s1204_s23  ;;  %s1625_s23 = smov %s1295_s30 }
 0x32a   : > { %s1626_s24 = smov %s1283_s27  ;;  %21 = sbr.rel (!%p19_p8) target bundleno = 5 (0x5), region = 89 }
 0x32f   :  { %935 = vsyncpa [#allocation5], 1 }
 0x330   :  { %937 = vsyncpa [#allocation5 + $0x1], 1 }
 0x331   :  { %938 = vsyncpa [#allocation6], 1 }
 0x332   :  { %940 = vsyncpa [#allocation6 + $0x1], 1 }

</bundles_post_ra>
